<compile_context>
chip_gen: v7x
topology: tpu7x:2x2x1
jax: 0.10.0
libtpu: 0.0.40
codegen_flags: <defaults>
</compile_context>

<pallas_src>
import functools

import jax
import jax.numpy as jnp
from jax.experimental import pallas as pl
from jax.experimental.pallas import tpu as pltpu

_LANES = 128
_SUBLANES = 8
_TILE = _LANES * _SUBLANES  # 1024 elements

# ~2 MiB per block per buffer: in+out double-buffered = 4x block bytes = 8 MiB,
# inside every generation's default scoped VMEM (v5e: 16 MiB), and big enough
# that the ~0.35 us per-grid-step overhead is well hidden on v6e/v7x.
_TARGET_BLOCK_BYTES = 2 * 1024 * 1024


def _quant_kernel(x_ref, o_ref, *, a_bit: int):
    # Upcast once and do the quantization math in f32 so bf16/fp16 inputs
    # match the float32 PyTorch reference (and avoid per-op converts on v5e).
    x = x_ref[...].astype(jnp.float32)
    xc = jnp.clip(x, 0.0, 1.0)
    if a_bit == 1:
        # sign(clamp(x, 0, 1)): single compare + select.
        out = jnp.where(xc > 0.0, 1.0, 0.0)
    else:
        n = float(2 ** a_bit - 1)
        inv_n = 1.0 / n
        out = jnp.round(xc * n) * inv_n  # multiply by 1/n, no divide
    o_ref[...] = out.astype(o_ref.dtype)


def activation_quantize(x: jax.Array, a_bit: int) -> jax.Array:
    """Forward pass of activation_quantize_fn as a Pallas TPU kernel."""
    assert a_bit <= 8 or a_bit == 32
    if a_bit == 32:
        # Identity path (no quantization) — no kernel needed.
        return x

    orig_shape = x.shape
    orig_dtype = x.dtype

    flat = x.reshape(-1)
    total = flat.shape[0]
    if total == 0:
        return x

    # Lane-dense slab.  Fast path: a size that is already a multiple of 8*128
    # reshapes for free (metadata only).  Only ragged sizes pay for a pad.
    rem = total % _TILE
    if rem != 0:
        flat = jnp.pad(flat, (0, _TILE - rem))
    rows = flat.shape[0] // _LANES
    slab = flat.reshape(rows, _LANES)

    # Block sizing by bytes, not rows (f32 -> 4096 rows, bf16 -> 8192 rows).
    itemsize = jnp.dtype(orig_dtype).itemsize
    block_rows = max(_SUBLANES, _TARGET_BLOCK_BYTES // (_LANES * itemsize))
    block_rows = (block_rows // _SUBLANES) * _SUBLANES
    block_rows = min(block_rows, rows)
    # Partial last block (rows % block_rows != 0) is handled by Pallas.
    grid = (pl.cdiv(rows, block_rows),)

    kernel = functools.partial(_quant_kernel, a_bit=a_bit)
    out_slab = pl.pallas_call(
        kernel,
        out_shape=jax.ShapeDtypeStruct((rows, _LANES), orig_dtype),
        grid_spec=pltpu.PrefetchScalarGridSpec(
            num_scalar_prefetch=0,
            grid=grid,
            in_specs=[pl.BlockSpec((block_rows, _LANES), lambda i: (i, 0))],
            out_specs=pl.BlockSpec((block_rows, _LANES), lambda i: (i, 0)),
        ),
        compiler_params=pltpu.CompilerParams(
            dimension_semantics=("parallel",)
        ),
    )(slab)

    out_flat = out_slab.reshape(-1)
    if rem != 0:
        out_flat = out_flat[:total]
    return out_flat.reshape(orig_shape)


def _reference(x, a_bit):
    # Float32 reference (matches the PyTorch module run in fp32).
    if a_bit == 32:
        return x
    xc = jnp.clip(x.astype(jnp.float32), 0.0, 1.0)
    if a_bit == 1:
        out = jnp.sign(xc)
    else:
        n = float(2 ** a_bit - 1)
        out = jnp.round(xc * n) / n
    return out.astype(x.dtype)


if __name__ == "__main__":
    key = jax.random.PRNGKey(0)
    ok = True

    # NCHW activation tensor, small shape (multiple of 1024 elems -> no pad).
    x = jax.random.normal(key, (2, 4, 16, 16), dtype=jnp.float32)
    for a_bit in (4, 8, 1, 32):
        y = jax.block_until_ready(activation_quantize(x, a_bit))
        ref = _reference(x, a_bit)
        if not jnp.allclose(y, ref, atol=1e-6, rtol=1e-6):
            ok = False
            print(f"MISMATCH for a_bit={a_bit} (f32, aligned)")

    # Ragged element count -> exercises the pad/trim path.
    x_ragged = jax.random.normal(jax.random.PRNGKey(1), (3, 5, 7, 11),
                                 dtype=jnp.float32)
    for a_bit in (4, 1):
        y = jax.block_until_ready(activation_quantize(x_ragged, a_bit))
        ref = _reference(x_ragged, a_bit)
        if not jnp.allclose(y, ref, atol=1e-6, rtol=1e-6):
            ok = False
            print(f"MISMATCH for a_bit={a_bit} (f32, ragged)")

    # bf16 input: kernel computes in f32 then casts back.
    x_bf16 = jax.random.normal(jax.random.PRNGKey(2), (2, 4, 16, 16),
                               dtype=jnp.bfloat16)
    y = jax.block_until_ready(activation_quantize(x_bf16, 8))
    ref = _reference(x_bf16, 8)
    if not jnp.allclose(y.astype(jnp.float32), ref.astype(jnp.float32),
                        atol=1e-2, rtol=1e-2):
        ok = False
        print("MISMATCH for a_bit=8 (bf16)")

    if ok:
        print("KERNEL_OK")
</pallas_src>

<mosaic_0001>
module attributes {stable_mosaic.version = 11 : i64} {
  func.func @_quant_kernel(%arg0: i32, %arg1: memref<16x128xf32, #tpu.memory_space<vmem>>, %arg2: memref<16x128xf32, #tpu.memory_space<vmem>>) attributes {dimension_semantics = [#tpu.dimension_semantics<parallel>], iteration_bounds = array<i64: 1>, scalar_prefetch = 0 : i64, scratch_operands = 0 : i64, tpu.core_type = #tpu.core_type<tc>, window_params = [{transform_indices = @transform_0, window_bounds = array<i64: 16, 128>}, {transform_indices = @transform_1, window_bounds = array<i64: 16, 128>}]} {
    %c0 = arith.constant 0 : index
    %c0_0 = arith.constant 0 : index
    %0 = vector.load %arg1[%c0, %c0_0] : memref<16x128xf32, #tpu.memory_space<vmem>>, vector<16x128xf32>
    %cst = arith.constant 0.000000e+00 : f32
    %cst_1 = arith.constant 1.000000e+00 : f32
    %1 = vector.broadcast %cst : f32 to vector<16x128xf32>
    %2 = arith.maximumf %1, %0 : vector<16x128xf32>
    %3 = vector.broadcast %cst_1 : f32 to vector<16x128xf32>
    %4 = arith.minimumf %3, %2 : vector<16x128xf32>
    %cst_2 = arith.constant 1.500000e+01 : f32
    %5 = vector.broadcast %cst_2 : f32 to vector<16x128xf32>
    %6 = arith.mulf %4, %5 : vector<16x128xf32>
    %7 = math.roundeven %6 : vector<16x128xf32>
    %cst_3 = arith.constant 0.0666666701 : f32
    %8 = vector.broadcast %cst_3 : f32 to vector<16x128xf32>
    %9 = arith.mulf %7, %8 : vector<16x128xf32>
    %c0_4 = arith.constant 0 : index
    %c0_5 = arith.constant 0 : index
    %10 = vector.load %arg2[%c0_4, %c0_5] : memref<16x128xf32, #tpu.memory_space<vmem>>, vector<16x128xf32>
    tpu.vector_store %arg2[%c0_4, %c0_5], %9 {strides = array<i32>} : memref<16x128xf32, #tpu.memory_space<vmem>>, vector<16x128xf32>,
    return
  }
  func.func @transform_0(%arg0: i32) -> (i32, i32) {
    %c0_i32 = arith.constant 0 : i32
    %c0_i32_0 = arith.constant 0 : i32
    return %arg0, %c0_i32 : i32, i32
  }
  func.func @transform_1(%arg0: i32) -> (i32, i32) {
    %c0_i32 = arith.constant 0 : i32
    %c0_i32_0 = arith.constant 0 : i32
    return %arg0, %c0_i32 : i32, i32
  }
}

</mosaic_0001>

<bundles_post_ra>
// kernel: tpu_custom_call.1
= control target key start
LH: loop header
LB: loop body
LE: loop exit
PB: predicated region body
PF: predicated region fallthrough
CT: control target
= control target key end

     0   :  { %6 = vsyncpa [#allocation3], 0  ;;  %s152_s0 = inlined_call_operand.hbm [shape: f32[16,128], index: 0, kind: input, shape index: {}]   ;;  %s153_s1 = inlined_call_operand.hbm [shape: f32[16,128], index: 1, kind: output, shape index: {}]  }
   0x1   :  { %7 = vsyncpa [#allocation4], 0  ;;  %s108_s6 = smov [#allocation2]   ;;  %s60_s10 = scalar_lea.hbm %s152_s0, 256 }
   0x2   :  { %s13_s7 = sshll.u32 %s108_s6, 4  ;;  %p61_p0 = scmp.ne.s32.totalorder %s152_s0, %s60_s10  ;;  %s14_s7 = int_to_ptr.vmem [resolvable:$true] %s13_s7 }
   0x3   :  { %p64_p1 = scmp.lt.u32.totalorder %s60_s10, %s152_s0 }
   0x5   :  { %p66_p2 = pnand %p64_p1, %p61_p0 }
   0x7   :  { %69 = shalt.err (!%p66_p2)
}
   0x8   :  { %s70_s15 = scalar_lea.vmem %s14_s7, 256  ;;  %p75_p4 = scmp.lt.s32.totalorder %s14_s7, %s14_s7 }
   0x9   :  { %p71_p3 = scmp.ne.s32.totalorder %s14_s7, %s70_s15  ;;  %p76_p5 = scmp.lt.s32.totalorder %s70_s15, %s70_s15 }
   0xb   :  { %p77_p6 = por %p76_p5, %p75_p4 }
   0xd   :  { %p78_p7 = pnand %p77_p6, %p71_p3 }
   0xf   :  { %81 = shalt.err (!%p78_p7)
}
  0x10   :  { %s109_s16 = smov 128   ;;  %s110_s17 = smov 8  }
  0x11   :  { %19 = dma.hbm_to_vmem [thread:$0]  %s152_s0, 256, %s14_s7, [#allocation3], %s109_s16, %s109_s16, %s110_s17  }
  0x12   :  { %104 = dma.done.wait [#allocation3], 256  }
  0x13   :  { %105 = vsyncadd [#allocation3], 4294967040  ;;  %v23_v0 = vld [vmem:[#allocation2] sm:$0xff]  ;;  %v24_v1 = vld [vmem:[#allocation2 + $0x8] sm:$0xff]  ;;  %s111_s20 = smov [#allocation5]  }
  0x14   :  { %v25_v2 = vmax.f32 %v23_v0, 0.0  ;;  %v26_v3 = vmax.f32 %v24_v1, 0.0  ;;  %s42_s21 = sshll.u32 %s111_s20, 4  ;;  %s43_s21 = int_to_ptr.vmem [resolvable:$true] %s42_s21 }
  0x15   :  { %s82_s0 = scalar_lea.vmem %s43_s21, 256  ;;  %p87_p9 = scmp.lt.s32.totalorder %s43_s21, %s43_s21 }
  0x16   :  { %v27_v4 = vmin.f32 %v25_v2, 1.0  ;;  %v28_v5 = vmin.f32 %v26_v3, 1.0  ;;  %p83_p8 = scmp.ne.s32.totalorder %s43_s21, %s82_s0  ;;  %p88_p10 = scmp.lt.s32.totalorder %s82_s0, %s82_s0 }
  0x18   :  { %v29_v6 = vmul.f32 15.0, %v27_v4  ;;  %v30_v7 = vmul.f32 15.0, %v28_v5  ;;  %p89_p11 = por %p88_p10, %p87_p9 }
  0x1a   :  { %v54_v8 = vround.rtne.f32 %v29_v6  ;;  %v55_v9 = vround.rtne.f32 %v30_v7  ;;  %p90_p12 = pnand %p89_p11, %p83_p8 }
  0x1c   :  { %v33_v10 = vmul.f32 0.06666667, %v54_v8  ;;  %v34_v11 = vmul.f32 0.06666667, %v55_v9 }
  0x1e   :  { %35 = vst [vmem:[#allocation5] sm:$0xff] %v33_v10  ;;  %36 = vst [vmem:[#allocation5 + $0x8] sm:$0xff] %v34_v11 }
  0x1f   :  { %93 = shalt.err (!%p90_p12)
}
  0x20   :  { %s94_s24 = scalar_lea.hbm %s153_s1, 256 }
  0x21   :  { %p95_p13 = scmp.ne.s32.totalorder %s153_s1, %s94_s24  ;;  %p98_p0 = scmp.lt.u32.totalorder %s94_s24, %s153_s1 }
  0x23   :  { %p100_p1 = pnand %p98_p0, %p95_p13 }
  0x25   :  { %103 = shalt.err (!%p100_p1)
}
  0x26   :  { %48 = dma.vmem_to_hbm [thread:$0]  %s43_s21, 256, %s153_s1, [#allocation4], %s109_s16, %s109_s16, %s110_s17  }
  0x27   :  { %106 = dma.done.wait [#allocation4], 256  }
  0x28   :  { %107 = vsyncadd [#allocation4], 4294967040 }
  0x29   :  { %52 = vsyncpa [#allocation3], 1 }
  0x2a   :  { %53 = vsyncpa [#allocation4], 1 }

</bundles_post_ra>
